<compile_context>
chip_gen: v5e
topology: v5e:2x2
jax: 0.10.0
libtpu: 0.0.40
codegen_flags: <defaults>
</compile_context>

<pallas_src>
import numpy as np

import jax
import jax.numpy as jnp
from jax.experimental import pallas as pl
from jax.experimental.pallas import tpu as pltpu


def make_position_encoding_table(n_positions, hidden_size, dtype=jnp.float32):
    """Exactly mirrors the PyTorch __init__ construction of self.enc.weight."""
    position_enc = np.array(
        [
            [pos / np.power(10000, 2 * (j // 2) / hidden_size) for j in range(hidden_size)]
            if pos != 0
            else np.zeros(hidden_size)
            for pos in range(n_positions)
        ]
    )
    position_enc[1:, 0::2] = np.sin(position_enc[1:, 0::2])
    position_enc[1:, 1::2] = np.cos(position_enc[1:, 1::2])
    return jnp.asarray(position_enc, dtype=dtype)


def _add_posenc_kernel(x_ref, enc_ref, out_ref):
    # Pure VPU elementwise add; enc block (1, tl) broadcasts against x block (Bb, tl).
    out_ref[...] = x_ref[...] + enc_ref[...]


# Double-buffered VMEM budget for all pipelined blocks (x, out, enc). Kept well
# under v7x's 64 MiB physical VMEM; the explicit limit below also raises v5e's
# 16 MiB default scoped VMEM so large (multi-MiB) blocks are still allowed.
_BLOCK_BYTE_BUDGET = 20 * 1024 * 1024
_VMEM_LIMIT_BYTES = 32 * 1024 * 1024


def _choose_tiles(batch, width, itemsize):
    """Pick (batch_block, lane_block) for the flattened (batch, width) problem.

    Double-buffered footprint ~= 2 * (x_block + out_block + enc_block)
                               = 2 * (2*Bb*tl + tl) * itemsize.
    """

    def footprint(bb, tl):
        return 2 * (2 * bb * tl + tl) * itemsize

    def max_lane_tile(bb):
        tl = _BLOCK_BYTE_BUDGET // (2 * (2 * bb + 1) * itemsize)
        return (tl // 128) * 128

    # Whole problem fits comfortably -> a single block, a single grid step.
    if footprint(batch, width) <= _BLOCK_BYTE_BUDGET:
        return batch, width

    # Full batch per block, tile the lane-dense flattened dim in multiples of 128.
    tl = max_lane_tile(batch)
    if tl >= 128:
        return batch, min(tl, width)

    # Very large batch: shrink the batch block (multiple of 8, or full batch).
    bb = 8 if batch >= 8 else batch
    tl = max(128, max_lane_tile(bb))
    return bb, min(tl, width)


def position_encoding(x, enc_table):
    """Pallas TPU implementation of PositionEncoding.forward.

    x:         (B, S, H)
    enc_table: (n_positions, H) sinusoidal table, n_positions >= S
    returns:   (B, S, H) == x + enc_table[:S]
    """
    B, S, H = x.shape
    n_positions, H2 = enc_table.shape
    assert H == H2, "hidden_size mismatch between x and encoding table"
    assert S <= n_positions, "sequence length exceeds n_positions"

    # nn.Embedding(arange(S)) == static slice of the weight table; cast once to
    # the activation dtype so the kernel streams the minimum number of bytes.
    # TODO(synk): PyTorch promotes the add through f32 when x is lower precision;
    # here the add is deliberately performed in x.dtype.
    enc = enc_table[:S].astype(x.dtype)

    # Flatten (S, H) -> W so the kernel's last (lane) dim is a large multiple of
    # 128 regardless of H; the add is elementwise with a batch broadcast, so this
    # is pure layout plumbing.
    W = S * H
    x2d = x.reshape(B, W)
    enc2d = enc.reshape(1, W)

    itemsize = jnp.dtype(x.dtype).itemsize
    bb, tl = _choose_tiles(B, W, itemsize)

    # Lane tiles on the OUTER axis, batch tiles on the INNER axis: the enc block
    # index (0, l) is constant across the inner axis, so the encoding block stays
    # resident in VMEM and is only fetched once per lane tile.
    grid = (pl.cdiv(W, tl), pl.cdiv(B, bb))

    in_specs = [
        pl.BlockSpec((bb, tl), lambda l, b: (b, l)),  # x
        pl.BlockSpec((1, tl), lambda l, b: (0, l)),   # enc (resident across batch)
    ]
    out_specs = pl.BlockSpec((bb, tl), lambda l, b: (b, l))

    out2d = pl.pallas_call(
        _add_posenc_kernel,
        out_shape=jax.ShapeDtypeStruct((B, W), x.dtype),
        grid=grid,
        in_specs=in_specs,
        out_specs=out_specs,
        compiler_params=pltpu.CompilerParams(
            dimension_semantics=("parallel", "parallel"),
            vmem_limit_bytes=_VMEM_LIMIT_BYTES,
        ),
    )(x2d, enc2d)

    return out2d.reshape(B, S, H)


def _reference(x, enc_table):
    S = x.shape[1]
    return x + enc_table[:S][None, :, :].astype(x.dtype)


if __name__ == "__main__":
    # Small, deterministic example shapes: batch=2, seq=8, hidden=32, n_positions=16.
    B, S, H = 2, 8, 32
    n_positions = 16

    enc_table = make_position_encoding_table(n_positions, H, dtype=jnp.float32)

    key = jax.random.PRNGKey(0)
    x = jax.random.normal(key, (B, S, H), dtype=jnp.float32)

    out = position_encoding(x, enc_table)
    out = jax.block_until_ready(out)

    out_ref = _reference(x, enc_table)
    np.testing.assert_allclose(np.asarray(out), np.asarray(out_ref), atol=1e-6, rtol=1e-6)

    print("KERNEL_OK")
</pallas_src>

<mosaic_0001>
module attributes {stable_mosaic.version = 11 : i64} {
  func.func @_add_posenc_kernel(%arg0: i32, %arg1: i32, %arg2: memref<2x256xf32, #tpu.memory_space<vmem>>, %arg3: memref<1x256xf32, #tpu.memory_space<vmem>>, %arg4: memref<2x256xf32, #tpu.memory_space<vmem>>) attributes {dimension_semantics = [#tpu.dimension_semantics<parallel>, #tpu.dimension_semantics<parallel>], iteration_bounds = array<i64: 1, 1>, scalar_prefetch = 0 : i64, scratch_operands = 0 : i64, tpu.core_type = #tpu.core_type<tc>, window_params = [{transform_indices = @transform_0, window_bounds = array<i64: 2, 256>}, {transform_indices = @transform_1, window_bounds = array<i64: 1, 256>}, {transform_indices = @transform_2, window_bounds = array<i64: 2, 256>}]} {
    %c0 = arith.constant 0 : index
    %c0_0 = arith.constant 0 : index
    %0 = vector.load %arg2[%c0, %c0_0] : memref<2x256xf32, #tpu.memory_space<vmem>>, vector<2x256xf32>
    %c0_1 = arith.constant 0 : index
    %c0_2 = arith.constant 0 : index
    %1 = vector.load %arg3[%c0_1, %c0_2] : memref<1x256xf32, #tpu.memory_space<vmem>>, vector<1x256xf32>
    %2 = vector.broadcast %1 : vector<1x256xf32> to vector<2x256xf32>
    %3 = arith.addf %0, %2 : vector<2x256xf32>
    %c0_3 = arith.constant 0 : index
    %c0_4 = arith.constant 0 : index
    %4 = vector.load %arg4[%c0_3, %c0_4] : memref<2x256xf32, #tpu.memory_space<vmem>>, vector<2x256xf32>
    tpu.vector_store %arg4[%c0_3, %c0_4], %3 {strides = array<i32>} : memref<2x256xf32, #tpu.memory_space<vmem>>, vector<2x256xf32>,
    return
  }
  func.func @transform_0(%arg0: i32, %arg1: i32) -> (i32, i32) {
    %c0_i32 = arith.constant 0 : i32
    return %arg1, %arg0 : i32, i32
  }
  func.func @transform_1(%arg0: i32, %arg1: i32) -> (i32, i32) {
    %c0_i32 = arith.constant 0 : i32
    %c0_i32_0 = arith.constant 0 : i32
    return %c0_i32, %arg0 : i32, i32
  }
  func.func @transform_2(%arg0: i32, %arg1: i32) -> (i32, i32) {
    %c0_i32 = arith.constant 0 : i32
    return %arg1, %arg0 : i32, i32
  }
}

</mosaic_0001>

<bundles_post_ra>
// kernel: tpu_custom_call.1
= control target key start
LH: loop header
LB: loop body
LE: loop exit
PB: predicated region body
PF: predicated region fallthrough
CT: control target
= control target key end

     0   :  { %7 = vsyncpa [#allocation3], 0  ;;  %s177_s0 = inlined_call_operand.hbm [shape: f32[2,256], index: 0, kind: input, shape index: {}]   ;;  %s178_s1 = inlined_call_operand.hbm [shape: f32[1,256], index: 1, kind: input, shape index: {}]   ;;  %s179_s2 = inlined_call_operand.hbm [shape: f32[2,256], index: 2, kind: output, shape index: {}]  }
   0x1   :  { %8 = vsyncpa [#allocation6], 0 }
   0x2   :  { %9 = vsyncpa [#allocation4], 0  ;;  %s15_s11 = sshll.u32 %s177_s0, 4  ;;  %s150_s12 = smov [#allocation2]   ;;  %s16_s11 = int_to_ptr.hbm [resolvable:$true] %s15_s11 }
   0x3   :  { %s17_s13 = sshll.u32 %s150_s12, 4  ;;  %s26_s16 = sshll.u32 %s178_s1, 4  ;;  %s18_s13 = int_to_ptr.vmem [resolvable:$true] %s17_s13  ;;  %s27_s16 = int_to_ptr.hbm [resolvable:$true] %s26_s16 }
   0x4   :  { %20 = dma.hbm_to_vmem [thread:$0]  %s16_s11, 64, %s18_s13, [#allocation3]  }
   0x5   :  { %s151_s17 = smov [#allocation5]  }
   0x6   :  { %s28_s18 = sshll.u32 %s151_s17, 4  ;;  %s29_s18 = int_to_ptr.vmem [resolvable:$true] %s28_s18 }
   0x7   :  { %31 = dma.hbm_to_vmem [thread:$0]  %s27_s16, 32, %s29_s18, [#allocation6]  }
   0x8   :  { %144 = dma.done.wait [#allocation3], 64  }
   0x9   :  { %145 = vsyncadd [#allocation3], 4294967232 }
   0xa   :  { %146 = dma.done.wait [#allocation6], 32  }
   0xb   :  { %147 = vsyncadd [#allocation6], 4294967264  ;;  %v41_v0 = vld [vmem:[#allocation5] sm:$0x3]  ;;  %vm46_vm0 = vcmask 1041408   ;;  %s152_s0 = smov [#allocation7]  }
   0xc   :  { %v43_v1 = vperm.slane %v41_v0, 0  ;;  %v44_v2 = vperm.slane %v41_v0, 1  ;;  %v40_v3 = vld [vmem:[#allocation2] sm:$0xf]  ;;  %s56_s19 = sshll.u32 %s152_s0, 4  ;;  %s58_s21 = sshll.u32 %s179_s2, 4  ;;  %s57_s19 = int_to_ptr.vmem [resolvable:$true] %s56_s19  ;;  %s59_s21 = int_to_ptr.hbm [resolvable:$true] %s58_s21 }
   0xe   :  { %v45_v4 = vrot.slane %v44_v2, 6 }
  0x10   :  { %v47_v5 = vsel %vm46_vm0, %v43_v1, %v45_v4 }
  0x11   :  { %v49_v6 = vadd.f32 %v47_v5, %v40_v3 }
  0x13   :  { %50 = vst [vmem:[#allocation7] sm:$0xf] %v49_v6 }
  0x14   :  { %61 = dma.vmem_to_hbm [thread:$0]  %s57_s19, 64, %s59_s21, [#allocation4]  }
  0x15   :  { %148 = dma.done.wait [#allocation4], 64  }
  0x16   :  { %149 = vsyncadd [#allocation4], 4294967232 }
  0x17   :  { %66 = vsyncpa [#allocation3], 1 }
  0x18   :  { %67 = vsyncpa [#allocation6], 1 }
  0x19   :  { %68 = vsyncpa [#allocation4], 1 }

</bundles_post_ra>
